<compile_context>
chip_gen: v7x
topology: tpu7x:2x2x1
jax: 0.10.0
libtpu: 0.0.40
codegen_flags: <defaults>
</compile_context>

<pallas_src>
import numpy as np

import jax
import jax.numpy as jnp
from jax.experimental import pallas as pl
from jax.experimental.pallas import tpu as pltpu

d = 2
adj_list = [[1, 2, 3], [0, 2, 3], [0, 1, 3], [0, 1, 2], [5, 6], [4, 6], [4, 5], [1, 3]]
size_vertex = len(adj_list)


def func_L(w):
    count = 1
    while w != 1:
        count += 1
        w //= 2
    return count


def func_n(w, j):
    li = [w]
    while w != 1:
        w = w // 2
        li.append(w)
    li.reverse()
    return li[j]


def _path_signs(wo, sv):
    """Host-side glue: node -> (+1/-1) sign for the hierarchical-softmax path of context wo."""
    w = sv + wo
    out = {}
    for j in range(1, func_L(w) - 1):
        nj = func_n(w, j)
        out[nj] = 1.0 if func_n(w, j + 1) == 2 * nj else -1.0
    return out


def _hier_batched_kernel(wi_ref, signs_ref, phi_ref, probT_ref, out_ref):
    # wi_ref    (VMEM) : (BB, 1)  int32   vertex index per pair
    # signs_ref (VMEM) : (BB, 2V) float32 +/-1 on path nodes, 0 elsewhere
    # phi_ref   (VMEM) : (V, d)   float32
    # probT_ref (VMEM) : (d, 2V)  float32 (prob_tensor transposed in the wrapper: layout plumbing)
    # out_ref   (VMEM) : (BB, 128) float32, probability broadcast across lanes (lane-dense store)
    phi = phi_ref[...]
    probT = probT_ref[...]
    V, D = phi.shape
    N = probT.shape[1]  # 2V

    # T[v, n] = <phi[v], prob[n]>  via D outer products — pure VPU, MXU deliberately unused.
    T = phi[:, 0:1] * probT[0:1, :]
    for k in range(1, D):
        T = T + phi[:, k:k + 1] * probT[k:k + 1, :]

    # s[b, n] = T[wi_b, n] : vectorized row-select as a masked accumulation over the V rows of T.
    wi = wi_ref[...]  # (BB, 1) int32
    s = (wi == 0).astype(jnp.float32) * T[0:1, :]
    for v in range(1, V):
        s = s + (wi == v).astype(jnp.float32) * T[v:v + 1, :]

    signs = signs_ref[...]                      # (BB, N)
    x = signs * s
    sig = 0.5 * (jnp.tanh(0.5 * x) + 1.0)       # sigmoid on the EUP (no divide, no exp overflow)
    factors = jnp.where(signs != 0.0, sig, 1.0)  # inactive path slots contribute 1.0

    # Product over the N (= 2V, power of two) node slots: log2(N) pairwise lane-slice multiplies.
    p = factors
    n = N
    while n > 1:
        h = n // 2
        p = p[:, :h] * p[:, h:n]
        n = h
    # p: (BB, 1) -> lane-dense output
    out_ref[...] = jnp.broadcast_to(p, out_ref.shape)


def hierarchical_forward_batched(phi, prob_tensor, wi_list, wo_list, *, block_b=512):
    """Batched equivalent of HierarchicalModel.forward over B (wi, wo) integer pairs -> (B,)."""
    V, D = phi.shape
    N = prob_tensor.shape[0]
    assert N == 2 * V
    assert N & (N - 1) == 0, "2*size_vertex must be a power of two for the in-kernel product tree"
    B = len(wi_list)
    assert len(wo_list) == B and B >= 1

    # Batch block: multiple of 8 sublanes, large when B is large (v6e guidance), capped at block_b.
    bb = max(8, min(block_b, -(-B // 8) * 8))
    bb = -(-bb // 8) * 8
    B_pad = -(-B // bb) * bb

    wi_arr = np.zeros((B_pad, 1), np.int32)
    wi_arr[:B, 0] = np.asarray(wi_list, np.int32)
    signs = np.zeros((B_pad, N), np.float32)      # padded rows stay all-zero -> p = 1.0 (discarded)
    for b, wo in enumerate(wo_list):
        for node, sgn in _path_signs(int(wo), V).items():
            signs[b, node] = sgn

    prob_T = jnp.transpose(prob_tensor)           # (d, 2V) — wrapper-side layout plumbing

    grid = (B_pad // bb,)
    out = pl.pallas_call(
        _hier_batched_kernel,
        out_shape=jax.ShapeDtypeStruct((B_pad, 128), jnp.float32),
        grid=grid,
        in_specs=[
            pl.BlockSpec((bb, 1), lambda i: (i, 0)),     # wi
            pl.BlockSpec((bb, N), lambda i: (i, 0)),     # signed path mask
            pl.BlockSpec((V, D), lambda i: (0, 0)),      # phi (resident)
            pl.BlockSpec((D, N), lambda i: (0, 0)),      # prob_tensor^T (resident)
        ],
        out_specs=pl.BlockSpec((bb, 128), lambda i: (i, 0)),
        compiler_params=pltpu.CompilerParams(dimension_semantics=("parallel",)),
    )(jnp.asarray(wi_arr), jnp.asarray(signs), phi, prob_T)
    return out[:B, 0]


def hierarchical_forward(phi, prob_tensor, wi, wo):
    """Drop-in equivalent of HierarchicalModel.forward(wi, wo); returns shape (1,)."""
    return hierarchical_forward_batched(phi, prob_tensor, [wi], [wo], block_b=8)


def _reference_forward(phi, prob_tensor, wi, wo):
    """Pure-JAX reference mirroring the PyTorch module."""
    sv = phi.shape[0]
    one_hot = jnp.zeros((sv,), jnp.float32).at[wi].set(1.0)
    h = one_hot @ phi
    w = sv + wo
    p = jnp.array([1.0], jnp.float32)
    for j in range(1, func_L(w) - 1):
        mult = 1.0 if func_n(w, j + 1) == 2 * func_n(w, j) else -1.0
        p = p * (1.0 / (1.0 + jnp.exp(-(mult * (prob_tensor[func_n(w, j)] @ h)))))
    return p


if __name__ == "__main__":
    key = jax.random.PRNGKey(0)
    k_phi, k_prob = jax.random.split(key)
    # Deterministic init mimicking torch.rand (uniform [0, 1)).
    phi = jax.random.uniform(k_phi, (size_vertex, d), dtype=jnp.float32)
    prob_tensor = jax.random.uniform(k_prob, (2 * size_vertex, d), dtype=jnp.float32)

    # Batch: every (wi, wo) combination -> B = 64 pairs evaluated in a single pallas_call.
    pairs = [(wi, wo) for wi in range(size_vertex) for wo in range(size_vertex)]
    wi_list = [p[0] for p in pairs]
    wo_list = [p[1] for p in pairs]

    p_batch = jax.block_until_ready(
        hierarchical_forward_batched(phi, prob_tensor, wi_list, wo_list)
    )
    p_ref = jnp.stack(
        [_reference_forward(phi, prob_tensor, wi, wo)[0] for wi, wo in pairs]
    )
    assert p_batch.shape == (len(pairs),)
    assert jnp.allclose(p_batch, p_ref, atol=1e-5, rtol=1e-5)

    # Single-pair API parity with the torch module (shape (1,)).
    p_single = jax.block_until_ready(hierarchical_forward(phi, prob_tensor, 2, 5))
    assert p_single.shape == (1,)
    assert jnp.allclose(p_single, _reference_forward(phi, prob_tensor, 2, 5), atol=1e-5, rtol=1e-5)

    print("KERNEL_OK")
</pallas_src>

<mosaic_0001>
module attributes {stable_mosaic.version = 11 : i64} {
  func.func @_hier_batched_kernel(%arg0: i32, %arg1: memref<64x1xi32, #tpu.memory_space<vmem>>, %arg2: memref<64x16xf32, #tpu.memory_space<vmem>>, %arg3: memref<8x2xf32, #tpu.memory_space<vmem>>, %arg4: memref<2x16xf32, #tpu.memory_space<vmem>>, %arg5: memref<64x128xf32, #tpu.memory_space<vmem>>) attributes {dimension_semantics = [#tpu.dimension_semantics<parallel>], iteration_bounds = array<i64: 1>, scalar_prefetch = 0 : i64, scratch_operands = 0 : i64, tpu.core_type = #tpu.core_type<tc>, window_params = [{transform_indices = @transform_0, window_bounds = array<i64: 64, 1>}, {transform_indices = @transform_1, window_bounds = array<i64: 64, 16>}, {pipeline_mode = #tpu.pipeline_mode<synchronous>, transform_indices = @transform_2, window_bounds = array<i64: 8, 2>}, {pipeline_mode = #tpu.pipeline_mode<synchronous>, transform_indices = @transform_3, window_bounds = array<i64: 2, 16>}, {transform_indices = @transform_4, window_bounds = array<i64: 64, 128>}]} {
    %c0 = arith.constant 0 : index
    %c0_0 = arith.constant 0 : index
    %0 = vector.load %arg3[%c0, %c0_0] : memref<8x2xf32, #tpu.memory_space<vmem>>, vector<8x2xf32>
    %c0_1 = arith.constant 0 : index
    %c0_2 = arith.constant 0 : index
    %1 = vector.load %arg4[%c0_1, %c0_2] : memref<2x16xf32, #tpu.memory_space<vmem>>, vector<2x16xf32>
    %2 = vector.extract_strided_slice %0 {offsets = [0, 0], sizes = [8, 1], strides = [1, 1]} : vector<8x2xf32> to vector<8x1xf32>
    %3 = vector.extract_strided_slice %1 {offsets = [0, 0], sizes = [1, 16], strides = [1, 1]} : vector<2x16xf32> to vector<1x16xf32>
    %4 = vector.broadcast %2 : vector<8x1xf32> to vector<8x16xf32>
    %5 = vector.broadcast %3 : vector<1x16xf32> to vector<8x16xf32>
    %6 = arith.mulf %4, %5 : vector<8x16xf32>
    %7 = vector.extract_strided_slice %0 {offsets = [0, 1], sizes = [8, 1], strides = [1, 1]} : vector<8x2xf32> to vector<8x1xf32>
    %8 = vector.extract_strided_slice %1 {offsets = [1, 0], sizes = [1, 16], strides = [1, 1]} : vector<2x16xf32> to vector<1x16xf32>
    %9 = vector.broadcast %7 : vector<8x1xf32> to vector<8x16xf32>
    %10 = vector.broadcast %8 : vector<1x16xf32> to vector<8x16xf32>
    %11 = arith.mulf %9, %10 : vector<8x16xf32>
    %12 = arith.addf %6, %11 : vector<8x16xf32>
    %c0_3 = arith.constant 0 : index
    %c0_4 = arith.constant 0 : index
    %13 = vector.load %arg1[%c0_3, %c0_4] : memref<64x1xi32, #tpu.memory_space<vmem>>, vector<64x1xi32>
    %c0_i32 = arith.constant 0 : i32
    %14 = vector.broadcast %c0_i32 : i32 to vector<64x1xi32>
    %15 = arith.cmpi eq, %13, %14 : vector<64x1xi32>
    %16 = arith.extui %15 : vector<64x1xi1> to vector<64x1xi32>
    %17 = arith.sitofp %16 : vector<64x1xi32> to vector<64x1xf32>
    %18 = vector.extract_strided_slice %12 {offsets = [0, 0], sizes = [1, 16], strides = [1, 1]} : vector<8x16xf32> to vector<1x16xf32>
    %19 = vector.broadcast %17 : vector<64x1xf32> to vector<64x16xf32>
    %20 = vector.broadcast %18 : vector<1x16xf32> to vector<64x16xf32>
    %21 = arith.mulf %19, %20 : vector<64x16xf32>
    %c1_i32 = arith.constant 1 : i32
    %22 = vector.broadcast %c1_i32 : i32 to vector<64x1xi32>
    %23 = arith.cmpi eq, %13, %22 : vector<64x1xi32>
    %24 = arith.extui %23 : vector<64x1xi1> to vector<64x1xi32>
    %25 = arith.sitofp %24 : vector<64x1xi32> to vector<64x1xf32>
    %26 = vector.extract_strided_slice %12 {offsets = [1, 0], sizes = [1, 16], strides = [1, 1]} : vector<8x16xf32> to vector<1x16xf32>
    %27 = vector.broadcast %25 : vector<64x1xf32> to vector<64x16xf32>
    %28 = vector.broadcast %26 : vector<1x16xf32> to vector<64x16xf32>
    %29 = arith.mulf %27, %28 : vector<64x16xf32>
    %30 = arith.addf %21, %29 : vector<64x16xf32>
    %c2_i32 = arith.constant 2 : i32
    %31 = vector.broadcast %c2_i32 : i32 to vector<64x1xi32>
    %32 = arith.cmpi eq, %13, %31 : vector<64x1xi32>
    %33 = arith.extui %32 : vector<64x1xi1> to vector<64x1xi32>
    %34 = arith.sitofp %33 : vector<64x1xi32> to vector<64x1xf32>
    %35 = vector.extract_strided_slice %12 {offsets = [2, 0], sizes = [1, 16], strides = [1, 1]} : vector<8x16xf32> to vector<1x16xf32>
    %36 = vector.broadcast %34 : vector<64x1xf32> to vector<64x16xf32>
    %37 = vector.broadcast %35 : vector<1x16xf32> to vector<64x16xf32>
    %38 = arith.mulf %36, %37 : vector<64x16xf32>
    %39 = arith.addf %30, %38 : vector<64x16xf32>
    %c3_i32 = arith.constant 3 : i32
    %40 = vector.broadcast %c3_i32 : i32 to vector<64x1xi32>
    %41 = arith.cmpi eq, %13, %40 : vector<64x1xi32>
    %42 = arith.extui %41 : vector<64x1xi1> to vector<64x1xi32>
    %43 = arith.sitofp %42 : vector<64x1xi32> to vector<64x1xf32>
    %44 = vector.extract_strided_slice %12 {offsets = [3, 0], sizes = [1, 16], strides = [1, 1]} : vector<8x16xf32> to vector<1x16xf32>
    %45 = vector.broadcast %43 : vector<64x1xf32> to vector<64x16xf32>
    %46 = vector.broadcast %44 : vector<1x16xf32> to vector<64x16xf32>
    %47 = arith.mulf %45, %46 : vector<64x16xf32>
    %48 = arith.addf %39, %47 : vector<64x16xf32>
    %c4_i32 = arith.constant 4 : i32
    %49 = vector.broadcast %c4_i32 : i32 to vector<64x1xi32>
    %50 = arith.cmpi eq, %13, %49 : vector<64x1xi32>
    %51 = arith.extui %50 : vector<64x1xi1> to vector<64x1xi32>
    %52 = arith.sitofp %51 : vector<64x1xi32> to vector<64x1xf32>
    %53 = vector.extract_strided_slice %12 {offsets = [4, 0], sizes = [1, 16], strides = [1, 1]} : vector<8x16xf32> to vector<1x16xf32>
    %54 = vector.broadcast %52 : vector<64x1xf32> to vector<64x16xf32>
    %55 = vector.broadcast %53 : vector<1x16xf32> to vector<64x16xf32>
    %56 = arith.mulf %54, %55 : vector<64x16xf32>
    %57 = arith.addf %48, %56 : vector<64x16xf32>
    %c5_i32 = arith.constant 5 : i32
    %58 = vector.broadcast %c5_i32 : i32 to vector<64x1xi32>
    %59 = arith.cmpi eq, %13, %58 : vector<64x1xi32>
    %60 = arith.extui %59 : vector<64x1xi1> to vector<64x1xi32>
    %61 = arith.sitofp %60 : vector<64x1xi32> to vector<64x1xf32>
    %62 = vector.extract_strided_slice %12 {offsets = [5, 0], sizes = [1, 16], strides = [1, 1]} : vector<8x16xf32> to vector<1x16xf32>
    %63 = vector.broadcast %61 : vector<64x1xf32> to vector<64x16xf32>
    %64 = vector.broadcast %62 : vector<1x16xf32> to vector<64x16xf32>
    %65 = arith.mulf %63, %64 : vector<64x16xf32>
    %66 = arith.addf %57, %65 : vector<64x16xf32>
    %c6_i32 = arith.constant 6 : i32
    %67 = vector.broadcast %c6_i32 : i32 to vector<64x1xi32>
    %68 = arith.cmpi eq, %13, %67 : vector<64x1xi32>
    %69 = arith.extui %68 : vector<64x1xi1> to vector<64x1xi32>
    %70 = arith.sitofp %69 : vector<64x1xi32> to vector<64x1xf32>
    %71 = vector.extract_strided_slice %12 {offsets = [6, 0], sizes = [1, 16], strides = [1, 1]} : vector<8x16xf32> to vector<1x16xf32>
    %72 = vector.broadcast %70 : vector<64x1xf32> to vector<64x16xf32>
    %73 = vector.broadcast %71 : vector<1x16xf32> to vector<64x16xf32>
    %74 = arith.mulf %72, %73 : vector<64x16xf32>
    %75 = arith.addf %66, %74 : vector<64x16xf32>
    %c7_i32 = arith.constant 7 : i32
    %76 = vector.broadcast %c7_i32 : i32 to vector<64x1xi32>
    %77 = arith.cmpi eq, %13, %76 : vector<64x1xi32>
    %78 = arith.extui %77 : vector<64x1xi1> to vector<64x1xi32>
    %79 = arith.sitofp %78 : vector<64x1xi32> to vector<64x1xf32>
    %80 = vector.extract_strided_slice %12 {offsets = [7, 0], sizes = [1, 16], strides = [1, 1]} : vector<8x16xf32> to vector<1x16xf32>
    %81 = vector.broadcast %79 : vector<64x1xf32> to vector<64x16xf32>
    %82 = vector.broadcast %80 : vector<1x16xf32> to vector<64x16xf32>
    %83 = arith.mulf %81, %82 : vector<64x16xf32>
    %84 = arith.addf %75, %83 : vector<64x16xf32>
    %c0_5 = arith.constant 0 : index
    %c0_6 = arith.constant 0 : index
    %85 = vector.load %arg2[%c0_5, %c0_6] : memref<64x16xf32, #tpu.memory_space<vmem>>, vector<64x16xf32>
    %86 = arith.mulf %85, %84 : vector<64x16xf32>
    %cst = arith.constant 5.000000e-01 : f32
    %87 = vector.broadcast %cst : f32 to vector<64x16xf32>
    %88 = arith.mulf %87, %86 : vector<64x16xf32>
    %89 = math.tanh %88 : vector<64x16xf32>
    %cst_7 = arith.constant 1.000000e+00 : f32
    %90 = vector.broadcast %cst_7 : f32 to vector<64x16xf32>
    %91 = arith.addf %89, %90 : vector<64x16xf32>
    %cst_8 = arith.constant 5.000000e-01 : f32
    %92 = vector.broadcast %cst_8 : f32 to vector<64x16xf32>
    %93 = arith.mulf %92, %91 : vector<64x16xf32>
    %cst_9 = arith.constant 0.000000e+00 : f32
    %94 = vector.broadcast %cst_9 : f32 to vector<64x16xf32>
    %95 = arith.cmpf one, %85, %94 : vector<64x16xf32>
    %cst_10 = arith.constant 1.000000e+00 : f32
    %96 = vector.broadcast %cst_10 : f32 to vector<64x16xf32>
    %97 = arith.select %95, %93, %96 : vector<64x16xi1>, vector<64x16xf32>
    %98 = vector.extract_strided_slice %97 {offsets = [0, 0], sizes = [64, 8], strides = [1, 1]} : vector<64x16xf32> to vector<64x8xf32>
    %99 = vector.extract_strided_slice %97 {offsets = [0, 8], sizes = [64, 8], strides = [1, 1]} : vector<64x16xf32> to vector<64x8xf32>
    %100 = arith.mulf %98, %99 : vector<64x8xf32>
    %101 = vector.extract_strided_slice %100 {offsets = [0, 0], sizes = [64, 4], strides = [1, 1]} : vector<64x8xf32> to vector<64x4xf32>
    %102 = vector.extract_strided_slice %100 {offsets = [0, 4], sizes = [64, 4], strides = [1, 1]} : vector<64x8xf32> to vector<64x4xf32>
    %103 = arith.mulf %101, %102 : vector<64x4xf32>
    %104 = vector.extract_strided_slice %103 {offsets = [0, 0], sizes = [64, 2], strides = [1, 1]} : vector<64x4xf32> to vector<64x2xf32>
    %105 = vector.extract_strided_slice %103 {offsets = [0, 2], sizes = [64, 2], strides = [1, 1]} : vector<64x4xf32> to vector<64x2xf32>
    %106 = arith.mulf %104, %105 : vector<64x2xf32>
    %107 = vector.extract_strided_slice %106 {offsets = [0, 0], sizes = [64, 1], strides = [1, 1]} : vector<64x2xf32> to vector<64x1xf32>
    %108 = vector.extract_strided_slice %106 {offsets = [0, 1], sizes = [64, 1], strides = [1, 1]} : vector<64x2xf32> to vector<64x1xf32>
    %109 = arith.mulf %107, %108 : vector<64x1xf32>
    %110 = vector.shape_cast %109 : vector<64x1xf32> to vector<64x1xf32>
    %111 = vector.broadcast %110 : vector<64x1xf32> to vector<64x128xf32>
    %c0_11 = arith.constant 0 : index
    %c0_12 = arith.constant 0 : index
    %112 = vector.load %arg5[%c0_11, %c0_12] : memref<64x128xf32, #tpu.memory_space<vmem>>, vector<64x128xf32>
    tpu.vector_store %arg5[%c0_11, %c0_12], %111 {strides = array<i32>} : memref<64x128xf32, #tpu.memory_space<vmem>>, vector<64x128xf32>,
    return
  }
  func.func @transform_0(%arg0: i32) -> (i32, i32) {
    %c0_i32 = arith.constant 0 : i32
    %c0_i32_0 = arith.constant 0 : i32
    return %arg0, %c0_i32 : i32, i32
  }
  func.func @transform_1(%arg0: i32) -> (i32, i32) {
    %c0_i32 = arith.constant 0 : i32
    %c0_i32_0 = arith.constant 0 : i32
    return %arg0, %c0_i32 : i32, i32
  }
  func.func @transform_2(%arg0: i32) -> (i32, i32) {
    %c0_i32 = arith.constant 0 : i32
    %c0_i32_0 = arith.constant 0 : i32
    %c0_i32_1 = arith.constant 0 : i32
    return %c0_i32, %c0_i32_0 : i32, i32
  }
  func.func @transform_3(%arg0: i32) -> (i32, i32) {
    %c0_i32 = arith.constant 0 : i32
    %c0_i32_0 = arith.constant 0 : i32
    %c0_i32_1 = arith.constant 0 : i32
    return %c0_i32, %c0_i32_0 : i32, i32
  }
  func.func @transform_4(%arg0: i32) -> (i32, i32) {
    %c0_i32 = arith.constant 0 : i32
    %c0_i32_0 = arith.constant 0 : i32
    return %arg0, %c0_i32 : i32, i32
  }
}

</mosaic_0001>

<bundles_post_ra>
// kernel: tpu_custom_call.1
= control target key start
LH: loop header
LB: loop body
LE: loop exit
PB: predicated region body
PF: predicated region fallthrough
CT: control target
= control target key end

     0   :  { %v1277_v3 = vmov 1   ;;  %v1278_v4 = vmov 0   ;;  %v1279_v8 = vmov 0.0   ;;  %s1630_s0 = inlined_call_operand.vmem [shape: s32[64,1], index: 0, kind: input, shape index: {}]   ;;  %s1631_s1 = inlined_call_operand.vmem [shape: f32[64,16], index: 1, kind: input, shape index: {}]   ;;  %s1632_s2 = inlined_call_operand.vmem [shape: f32[8,2], index: 2, kind: input, shape index: {}]   ;;  %s1633_s3 = inlined_call_operand.vmem [shape: f32[2,16], index: 3, kind: input, shape index: {}]   ;;  %s1634_s4 = inlined_call_operand.hbm [shape: f32[64,128], index: 4, kind: output, shape index: {}]  }
   0x1   :  { %v18_v0 = vld [vmem:[%s1632_s2] sm:$0xff]  ;;  %v1323_v2 = vld [vmem:[%s1630_s0 + $0x8] sm:$0xff]  ;;  %1074 = vset.pattern.permute.xlu0 %v1277_v3  ;;  %1076 = vset.pattern.permute.xlu1 %v1278_v4  ;;  %v1330_v5 = vld [vmem:[%s1630_s0 + $0x10] sm:$0xff] }
   0x2   :  { %v1318_v1 = vld [vmem:[%s1630_s0] sm:$0xff]  ;;  %vm49_vm1 = vcmp.eq.s32.totalorder %v1323_v2, 0  ;;  %v1335_v6 = vld [vmem:[%s1630_s0 + $0x18] sm:$0xff]  ;;  %v1340_v7 = vld [vmem:[%s1630_s0 + $0x30] sm:$0xff]  ;;  %31 = vperm.xlu0 %1074, %v18_v0   ;;  %vm50_vm2 = vcmp.eq.s32.totalorder %v1330_v5, 0 }
   0x3   :  { %vm48_vm0 = vcmp.eq.s32.totalorder %v1318_v1, 0  ;;  %v1001_v10 = vsel %vm49_vm1, 1.0, %v1279_v8  ;;  %vm51_vm3 = vcmp.eq.s32.totalorder %v1335_v6, 0  ;;  %v1349_v11 = vld [vmem:[%s1630_s0 + $0x38] sm:$0xff]  ;;  %v1354_v12 = vld [vmem:[%s1630_s0 + $0x20] sm:$0xff]  ;;  %v1002_v14 = vsel %vm50_vm2, 1.0, %v1279_v8 }
   0x4   :  { %v1000_v9 = vsel %vm48_vm0, 1.0, %v1279_v8  ;;  %v1003_v15 = vsel %vm51_vm3, 1.0, %v1279_v8  ;;  %vm54_vm4 = vcmp.eq.s32.totalorder %v1340_v7, 0  ;;  %v1362_v16 = vld [vmem:[%s1630_s0 + $0x28] sm:$0xff]  ;;  %vm55_vm5 = vcmp.eq.s32.totalorder %v1349_v11, 0 }
   0x5   :  { %v1077_v13 = vpack.i.bf16 %v1001_v10, %v1000_v9  ;;  %v1006_v17 = vsel %vm54_vm4, 1.0, %v1279_v8  ;;  %vm52_vm6 = vcmp.eq.s32.totalorder %v1354_v12, 0 }
   0x6   :  { %9 = vsyncpa [#allocation3], 0  ;;  %v1082_v18 = vpack.i.bf16 %v1003_v15, %v1002_v14  ;;  %v1007_v19 = vsel %vm55_vm5, 1.0, %v1279_v8  ;;  %vm53_vm7 = vcmp.eq.s32.totalorder %v1362_v16, 0  ;;  %vm128_vm8 = vcmp.eq.s32.totalorder %v1354_v12, 1  ;;  %1075 = vset.pattern.permute.xlu0 %v1278_v4  ;;  %s1281_s2 = smov 124  }
   0x7   :  { %1078 = vperm.xlu1 %1076, %v1077_v13   ;;  %v1004_v20 = vsel %vm52_vm6, 1.0, %v1279_v8  ;;  %v1005_v21 = vsel %vm53_vm7, 1.0, %v1279_v8  ;;  %vm129_vm9 = vcmp.eq.s32.totalorder %v1362_v16, 1  ;;  %22 = vperm.xlu0 %1075, %v18_v0   ;;  %v1092_v22 = vpack.i.bf16 %v1007_v19, %v1006_v17  ;;  %s1282_s22 = smov 126   ;;  %s1283_s23 = smov 127  }
   0x8   :  { %vm124_vm10 = vcmp.eq.s32.totalorder %v1318_v1, 1  ;;  %vm125_vm11 = vcmp.eq.s32.totalorder %v1323_v2, 1  ;;  %v1012_v23 = vsel %vm128_vm8, 1.0, %v1279_v8  ;;  %v1013_v24 = vsel %vm129_vm9, 1.0, %v1279_v8  ;;  %s1284_s24 = smov [#allocation2]  }
   0x9   :  { %v1087_v25 = vpack.i.bf16 %v1005_v21, %v1004_v20  ;;  %vm208_vm12 = vcmp.eq.s32.totalorder %v1318_v1, 2  ;;  %vm209_vm13 = vcmp.eq.s32.totalorder %v1323_v2, 2  ;;  %v1008_v26 = vsel %vm124_vm10, 1.0, %v1279_v8  ;;  %s989_s25 = sshll.u32 %s1284_s24, 4  ;;  %s990_s25 = int_to_ptr.vmem [resolvable:$true] %s989_s25 }
   0xa   :  { %v1009_v27 = vsel %vm125_vm11, 1.0, %v1279_v8  ;;  %v1107_v28 = vpack.i.bf16 %v1013_v24, %v1012_v23  ;;  %vm126_vm14 = vcmp.eq.s32.totalorder %v1330_v5, 1  ;;  %vm127_vm15 = vcmp.eq.s32.totalorder %v1335_v6, 1  ;;  %s1253_s26 = scalar_lea.vmem %s990_s25, 1024  ;;  %p1258_p1 = scmp.lt.s32.totalorder %s990_s25, %s990_s25 }
   0xb   :  { %1083 = vperm.xlu1 %1076, %v1082_v18   ;;  %1093 = vperm.xlu0 %1075, %v1092_v22   ;;  %v1016_v29 = vsel %vm208_vm12, 1.0, %v1279_v8  ;;  %v1017_v30 = vsel %vm209_vm13, 1.0, %v1279_v8  ;;  %v1097_v31 = vpack.i.bf16 %v1009_v27, %v1008_v26  ;;  %vm212_vm0 = vcmp.eq.s32.totalorder %v1354_v12, 2  ;;  %p1254_p0 = scmp.ne.s32.totalorder %s990_s25, %s1253_s26  ;;  %p1259_p2 = scmp.lt.s32.totalorder %s1253_s26, %s1253_s26 }
   0xc   :  { %vm213_vm1 = vcmp.eq.s32.totalorder %v1362_v16, 2  ;;  %v1010_v32 = vsel %vm126_vm14, 1.0, %v1279_v8  ;;  %v1011_v33 = vsel %vm127_vm15, 1.0, %v1279_v8  ;;  %v1117_v34 = vpack.i.bf16 %v1017_v30, %v1016_v29 }
   0xd   :  { %vm130_vm2 = vcmp.eq.s32.totalorder %v1340_v7, 1  ;;  %vm131_vm3 = vcmp.eq.s32.totalorder %v1349_v11, 1  ;;  %v1020_v35 = vsel %vm212_vm0, 1.0, %v1279_v8  ;;  %v1021_v36 = vsel %vm213_vm1, 1.0, %v1279_v8  ;;  %p1260_p3 = por %p1259_p2, %p1258_p1 }
   0xe   :  { %v1102_v37 = vpack.i.bf16 %v1011_v33, %v1010_v32  ;;  %vm292_vm4 = vcmp.eq.s32.totalorder %v1318_v1, 3  ;;  %vm293_vm5 = vcmp.eq.s32.totalorder %v1323_v2, 3  ;;  %v1014_v38 = vsel %vm130_vm2, 1.0, %v1279_v8 }
   0xf   :  { %1088 = vperm.xlu1 %1076, %v1087_v25   ;;  %1108 = vperm.xlu0 %1075, %v1107_v28   ;;  %v1015_v39 = vsel %vm131_vm3, 1.0, %v1279_v8  ;;  %v1127_v40 = vpack.i.bf16 %v1021_v36, %v1020_v35  ;;  %vm210_vm6 = vcmp.eq.s32.totalorder %v1330_v5, 2  ;;  %vm211_vm7 = vcmp.eq.s32.totalorder %v1335_v6, 2  ;;  %p1261_p4 = pnand %p1260_p3, %p1254_p0 }
  0x10   :  { %v1024_v41 = vsel %vm292_vm4, 1.0, %v1279_v8  ;;  %v1025_v42 = vsel %vm293_vm5, 1.0, %v1279_v8  ;;  %v1112_v43 = vpack.i.bf16 %v1015_v39, %v1014_v38  ;;  %vm296_vm8 = vcmp.eq.s32.totalorder %v1354_v12, 3 }
  0x11   :  { %vm297_vm9 = vcmp.eq.s32.totalorder %v1362_v16, 3  ;;  %v1018_v44 = vsel %vm210_vm6, 1.0, %v1279_v8  ;;  %v1019_v45 = vsel %vm211_vm7, 1.0, %v1279_v8  ;;  %v1137_v46 = vpack.i.bf16 %v1025_v42, %v1024_v41 }
  0x12   :  { %vm214_vm10 = vcmp.eq.s32.totalorder %v1340_v7, 2  ;;  %vm215_vm11 = vcmp.eq.s32.totalorder %v1349_v11, 2  ;;  %v1028_v47 = vsel %vm296_vm8, 1.0, %v1279_v8  ;;  %v1029_v48 = vsel %vm297_vm9, 1.0, %v1279_v8 }
  0x13   :  { %1098 = vperm.xlu1 %1076, %v1097_v31   ;;  %1118 = vperm.xlu0 %1075, %v1117_v34   ;;  %v1122_v49 = vpack.i.bf16 %v1019_v45, %v1018_v44  ;;  %vm376_vm12 = vcmp.eq.s32.totalorder %v1318_v1, 4  ;;  %vm377_vm13 = vcmp.eq.s32.totalorder %v1323_v2, 4  ;;  %v1022_v50 = vsel %vm214_vm10, 1.0, %v1279_v8 }
  0x14   :  { %v1023_v51 = vsel %vm215_vm11, 1.0, %v1279_v8  ;;  %v1147_v52 = vpack.i.bf16 %v1029_v48, %v1028_v47  ;;  %vm294_vm14 = vcmp.eq.s32.totalorder %v1330_v5, 3  ;;  %vm295_vm15 = vcmp.eq.s32.totalorder %v1335_v6, 3 }
  0x15   :  { %v1032_v53 = vsel %vm376_vm12, 1.0, %v1279_v8  ;;  %v1033_v54 = vsel %vm377_vm13, 1.0, %v1279_v8  ;;  %v1132_v55 = vpack.i.bf16 %v1023_v51, %v1022_v50  ;;  %vm380_vm0 = vcmp.eq.s32.totalorder %v1354_v12, 4 }
  0x16   :  { %vm381_vm1 = vcmp.eq.s32.totalorder %v1362_v16, 4  ;;  %v1026_v56 = vsel %vm294_vm14, 1.0, %v1279_v8  ;;  %v1027_v57 = vsel %vm295_vm15, 1.0, %v1279_v8  ;;  %v1157_v58 = vpack.i.bf16 %v1033_v54, %v1032_v53 }
  0x17   :  { %1103 = vperm.xlu1 %1076, %v1102_v37   ;;  %1128 = vperm.xlu0 %1075, %v1127_v40   ;;  %vm298_vm2 = vcmp.eq.s32.totalorder %v1340_v7, 3  ;;  %vm299_vm3 = vcmp.eq.s32.totalorder %v1349_v11, 3  ;;  %v1036_v59 = vsel %vm380_vm0, 1.0, %v1279_v8  ;;  %v1037_v60 = vsel %vm381_vm1, 1.0, %v1279_v8 }
  0x18   :  { %v1142_v61 = vpack.i.bf16 %v1027_v57, %v1026_v56  ;;  %vm460_vm4 = vcmp.eq.s32.totalorder %v1318_v1, 5  ;;  %vm461_vm5 = vcmp.eq.s32.totalorder %v1323_v2, 5  ;;  %v1030_v62 = vsel %vm298_vm2, 1.0, %v1279_v8 }
  0x19   :  { %v1031_v63 = vsel %vm299_vm3, 1.0, %v1279_v8  ;;  %v1167_v0 = vpack.i.bf16 %v1037_v60, %v1036_v59  ;;  %vm378_vm6 = vcmp.eq.s32.totalorder %v1330_v5, 4  ;;  %vm379_vm7 = vcmp.eq.s32.totalorder %v1335_v6, 4 }
  0x1a   :  { %v1040_v3 = vsel %vm460_vm4, 1.0, %v1279_v8  ;;  %v1041_v4 = vsel %vm461_vm5, 1.0, %v1279_v8  ;;  %v1152_v9 = vpack.i.bf16 %v1031_v63, %v1030_v62  ;;  %vm464_vm8 = vcmp.eq.s32.totalorder %v1354_v12, 5 }
  0x1b   :  { %1113 = vperm.xlu1 %1076, %v1112_v43   ;;  %1138 = vperm.xlu0 %1075, %v1137_v46   ;;  %vm465_vm9 = vcmp.eq.s32.totalorder %v1362_v16, 5  ;;  %v1034_v10 = vsel %vm378_vm6, 1.0, %v1279_v8  ;;  %v1035_v13 = vsel %vm379_vm7, 1.0, %v1279_v8  ;;  %v1177_v14 = vpack.i.bf16 %v1041_v4, %v1040_v3 }
  0x1c   :  { %vm382_vm10 = vcmp.eq.s32.totalorder %v1340_v7, 4  ;;  %vm383_vm11 = vcmp.eq.s32.totalorder %v1349_v11, 4  ;;  %v1044_v15 = vsel %vm464_vm8, 1.0, %v1279_v8  ;;  %v1045_v17 = vsel %vm465_vm9, 1.0, %v1279_v8 }
  0x1d   :  { %v1162_v18 = vpack.i.bf16 %v1035_v13, %v1034_v10  ;;  %vm544_vm12 = vcmp.eq.s32.totalorder %v1318_v1, 6  ;;  %vm545_vm13 = vcmp.eq.s32.totalorder %v1323_v2, 6  ;;  %v1038_v19 = vsel %vm382_vm10, 1.0, %v1279_v8 }
  0x1e   :  { %v1039_v20 = vsel %vm383_vm11, 1.0, %v1279_v8  ;;  %v1187_v21 = vpack.i.bf16 %v1045_v17, %v1044_v15  ;;  %vm462_vm14 = vcmp.eq.s32.totalorder %v1330_v5, 5  ;;  %vm463_vm15 = vcmp.eq.s32.totalorder %v1335_v6, 5 }
  0x1f   :  { %1123 = vperm.xlu1 %1076, %v1122_v49   ;;  %1148 = vperm.xlu0 %1075, %v1147_v52   ;;  %v1048_v22 = vsel %vm544_vm12, 1.0, %v1279_v8  ;;  %v1049_v23 = vsel %vm545_vm13, 1.0, %v1279_v8  ;;  %v1172_v24 = vpack.i.bf16 %v1039_v20, %v1038_v19  ;;  %vm548_vm0 = vcmp.eq.s32.totalorder %v1354_v12, 6 }
  0x20   :  { %vm549_vm1 = vcmp.eq.s32.totalorder %v1362_v16, 6  ;;  %v1042_v25 = vsel %vm462_vm14, 1.0, %v1279_v8  ;;  %v1043_v26 = vsel %vm463_vm15, 1.0, %v1279_v8  ;;  %v1197_v27 = vpack.i.bf16 %v1049_v23, %v1048_v22 }
  0x21   :  { %vm466_vm2 = vcmp.eq.s32.totalorder %v1340_v7, 5  ;;  %vm467_vm3 = vcmp.eq.s32.totalorder %v1349_v11, 5  ;;  %v1052_v28 = vsel %vm548_vm0, 1.0, %v1279_v8  ;;  %v1053_v29 = vsel %vm549_vm1, 1.0, %v1279_v8 }
  0x22   :  { %v1182_v30 = vpack.i.bf16 %v1043_v26, %v1042_v25  ;;  %vm628_vm4 = vcmp.eq.s32.totalorder %v1318_v1, 7  ;;  %vm629_vm5 = vcmp.eq.s32.totalorder %v1323_v2, 7  ;;  %v1046_v31 = vsel %vm466_vm2, 1.0, %v1279_v8 }
  0x23   :  { %1133 = vperm.xlu1 %1076, %v1132_v55   ;;  %1158 = vperm.xlu0 %1075, %v1157_v58   ;;  %v1047_v32 = vsel %vm467_vm3, 1.0, %v1279_v8  ;;  %v1207_v33 = vpack.i.bf16 %v1053_v29, %v1052_v28  ;;  %vm546_vm6 = vcmp.eq.s32.totalorder %v1330_v5, 6  ;;  %vm547_vm7 = vcmp.eq.s32.totalorder %v1335_v6, 6 }
  0x24   :  { %v1056_v34 = vsel %vm628_vm4, 1.0, %v1279_v8  ;;  %v1057_v35 = vsel %vm629_vm5, 1.0, %v1279_v8  ;;  %v1192_v36 = vpack.i.bf16 %v1047_v32, %v1046_v31  ;;  %vm632_vm8 = vcmp.eq.s32.totalorder %v1354_v12, 7 }
  0x25   :  { %vm633_vm9 = vcmp.eq.s32.totalorder %v1362_v16, 7  ;;  %v1050_v1 = vsel %vm546_vm6, 1.0, %v1279_v8  ;;  %v1051_v2 = vsel %vm547_vm7, 1.0, %v1279_v8  ;;  %v1217_v37 = vpack.i.bf16 %v1057_v35, %v1056_v34 }
  0x26   :  { %vm550_vm10 = vcmp.eq.s32.totalorder %v1340_v7, 6  ;;  %vm551_vm11 = vcmp.eq.s32.totalorder %v1349_v11, 6  ;;  %v1060_v38 = vsel %vm632_vm8, 1.0, %v1279_v8  ;;  %v1061_v39 = vsel %vm633_vm9, 1.0, %v1279_v8 }
  0x27   :  { %1143 = vperm.xlu1 %1076, %v1142_v61   ;;  %1168 = vperm.xlu0 %1075, %v1167_v0   ;;  %v1202_v40 = vpack.i.bf16 %v1051_v2, %v1050_v1  ;;  %v1054_v12 = vsel %vm550_vm10, 1.0, %v1279_v8  ;;  %v1055_v16 = vsel %vm551_vm11, 1.0, %v1279_v8  ;;  %v1227_v41 = vpack.i.bf16 %v1061_v39, %v1060_v38 }
  0x28   :  { %vm630_vm12 = vcmp.eq.s32.totalorder %v1330_v5, 7  ;;  %vm631_vm13 = vcmp.eq.s32.totalorder %v1335_v6, 7  ;;  %v1212_v42 = vpack.i.bf16 %v1055_v16, %v1054_v12  ;;  %vm634_vm14 = vcmp.eq.s32.totalorder %v1340_v7, 7 }
  0x29   :  { %v1058_v43 = vsel %vm630_vm12, 1.0, %v1279_v8  ;;  %v1059_v44 = vsel %vm631_vm13, 1.0, %v1279_v8  ;;  %vm635_vm15 = vcmp.eq.s32.totalorder %v1349_v11, 7  ;;  %v1062_v46 = vsel %vm634_vm14, 1.0, %v1279_v8  ;;  %v19_v11 = vld [vmem:[%s1633_s3] sm:$0x3] }
  0x2a   :  { %v1222_v45 = vpack.i.bf16 %v1059_v44, %v1058_v43  ;;  %v1063_v47 = vsel %vm635_vm15, 1.0, %v1279_v8  ;;  %v25_v48 = vlaneseq }
  0x2b   :  { %1153 = vperm.xlu1 %1076, %v1152_v9   ;;  %1178 = vperm.xlu0 %1075, %v1177_v14   ;;  %v1232_v5 = vpack.i.bf16 %v1063_v47, %v1062_v46 }
  0x2c   :  { %v26_v50 = vshrl.u32 %v25_v48, 7 }
  0x2e   :  { %v36_v53 = vsub.s32 1, %v26_v50  ;;  %v27_v54 = vsub.s32 0, %v26_v50  ;;  %v274_v3 = vsub.s32 2, %v26_v50  ;;  %v358_v4 = vsub.s32 3, %v26_v50 }
  0x2f   :  { %1163 = vperm.xlu1 %1076, %v1162_v18   ;;  %1188 = vperm.xlu0 %1075, %v1187_v21   ;;  %v442_v9 = vsub.s32 4, %v26_v50  ;;  %v526_v10 = vsub.s32 5, %v26_v50  ;;  %v610_v13 = vsub.s32 6, %v26_v50  ;;  %v694_v14 = vsub.s32 7, %v26_v50 }
  0x30   :  { %v37_v56 = vrot.slane %v19_v11, %v36_v53  ;;  %v28_v8 = vrot.slane %v19_v11, %v27_v54 }
  0x33   :  { %1173 = vperm.xlu1 %1076, %v1172_v24   ;;  %1198 = vperm.xlu0 %1075, %v1197_v27  }
  0x37   :  { %1183 = vperm.xlu1 %1076, %v1182_v30   ;;  %1208 = vperm.xlu0 %1075, %v1207_v33  }
  0x3b   :  { %1193 = vperm.xlu1 %1076, %v1192_v36   ;;  %1218 = vperm.xlu0 %1075, %v1217_v37  }
  0x3f   :  { %1203 = vperm.xlu1 %1076, %v1202_v40   ;;  %1228 = vperm.xlu0 %1075, %v1227_v41  }
  0x43   :  { %1213 = vperm.xlu1 %1076, %v1212_v42  }
  0x47   :  { %1223 = vperm.xlu1 %1076, %v1222_v45  }
  0x4b   :  { %1233 = vperm.xlu1 %1076, %v1232_v5  }
  0x81   :  { %v32_v6 = vpop.permute.xlu0 %31 }
  0x82   :  { %v38_v59 = vmul.f32 %v37_v56, %v32_v6 }
  0x86   :  { %v1079_v49 = vpop.permute.xlu1 %1078  ;;  %v23_v51 = vpop.permute.xlu0 %22 }
  0x87   :  { %v29_v60 = vmul.f32 %v28_v8, %v23_v51  ;;  %v1081_v17 = vunpack.i.h.bf16 %v1079_v49  ;;  %v1080_v18 = vunpack.i.l.bf16 %v1079_v49 }
  0x89   :  { %v39_v63 = vadd.f32 %v38_v59, %v29_v60 }
  0x8a   :  { %v1084_v52 = vpop.permute.xlu1 %1083  ;;  %v1483_v7 = vpop.permute.xlu0 %1093 }
  0x8b   :  { %v115_v21 = vrot.slane %v39_v63, %v27_v54  ;;  %v191_v22 = vrot.slane %v39_v63, %v36_v53  ;;  %v1086_v23 = vunpack.i.h.bf16 %v1084_v52  ;;  %v1085_v24 = vunpack.i.l.bf16 %v1084_v52 }
  0x8c   :  { %v1496_v26 = vrot.slane %v39_v63, %v274_v3  ;;  %v1498_v27 = vrot.slane %v39_v63, %v358_v4  ;;  %v1500_v28 = vrot.slane %v39_v63, %v442_v9  ;;  %v1502_v29 = vrot.slane %v39_v63, %v526_v10 }
  0x8d   :  { %v1504_v30 = vrot.slane %v39_v63, %v610_v13  ;;  %v1506_v31 = vrot.slane %v39_v63, %v694_v14  ;;  %v118_v37 = vmul.f32 %v1085_v24, %v115_v21  ;;  %v119_v38 = vmul.f32 %v1086_v23, %v115_v21 }
  0x8e   :  { %v1089_v55 = vpop.permute.xlu1 %1088  ;;  %v1109_v57 = vpop.permute.xlu0 %1108  ;;  %v1096_v16 = vunpack.i.h.bf16 %v1483_v7  ;;  %v1095_v41 = vunpack.i.l.bf16 %v1483_v7  ;;  %v116_v42 = vmul.f32 %v1080_v18, %v115_v21  ;;  %v117_v43 = vmul.f32 %v1081_v17, %v115_v21 }
  0x8f   :  { %v1111_v32 = vunpack.i.h.bf16 %v1109_v57  ;;  %v1110_v33 = vunpack.i.l.bf16 %v1109_v57  ;;  %v1091_v39 = vunpack.i.h.bf16 %v1089_v55  ;;  %v1090_v40 = vunpack.i.l.bf16 %v1089_v55 }
  0x90   :  { %v123_v11 = vmul.f32 %v1096_v16, %v115_v21  ;;  %v122_v55 = vmul.f32 %v1095_v41, %v115_v21 }
  0x91   :  { %v197_v44 = vmul.f32 %v1111_v32, %v191_v22  ;;  %v196_v45 = vmul.f32 %v1110_v33, %v191_v22  ;;  %v120_v51 = vmul.f32 %v1090_v40, %v115_v21  ;;  %v121_v52 = vmul.f32 %v1091_v39, %v115_v21 }
  0x92   :  { %v1099_v58 = vpop.permute.xlu1 %1098  ;;  %v1119_v61 = vpop.permute.xlu0 %1118 }
  0x93   :  { %v1101_v19 = vunpack.i.h.bf16 %v1099_v58  ;;  %v1100_v20 = vunpack.i.l.bf16 %v1099_v58  ;;  %v1121_v1 = vunpack.i.h.bf16 %v1119_v61  ;;  %v1120_v2 = vunpack.i.l.bf16 %v1119_v61 }
  0x94   :  { %v205_v57 = vadd.f32 %v197_v44, %v121_v52  ;;  %v204_v58 = vadd.f32 %v196_v45, %v120_v51 }
  0x95   :  { %v192_v35 = vmul.f32 %v1100_v20, %v191_v22  ;;  %v193_v36 = vmul.f32 %v1101_v19, %v191_v22  ;;  %v277_v49 = vmul.f32 %v1121_v1, %v1496_v26  ;;  %v276_v50 = vmul.f32 %v1120_v2, %v1496_v26 }
  0x96   :  { %v1488_v62 = vpop.permute.xlu1 %1103  ;;  %v1490_v0 = vpop.permute.xlu0 %1128 }
  0x97   :  { %v1106_v46 = vunpack.i.h.bf16 %v1488_v62  ;;  %v1105_v47 = vunpack.i.l.bf16 %v1488_v62  ;;  %v200_v6 = vadd.f32 %v192_v35, %v116_v42  ;;  %v201_v48 = vadd.f32 %v193_v36, %v117_v43 }
  0x98   :  { %v1131_v53 = vunpack.i.h.bf16 %v1490_v0  ;;  %v1130_v54 = vunpack.i.l.bf16 %v1490_v0 }
  0x99   :  { %v194_v59 = vmul.f32 %v1105_v47, %v191_v22  ;;  %v195_v60 = vmul.f32 %v1106_v46, %v191_v22  ;;  %v285_v62 = vadd.f32 %v277_v49, %v201_v48  ;;  %v284_v63 = vadd.f32 %v276_v50, %v200_v6 }
  0x9a   :  { %v1492_v15 = vpop.permute.xlu1 %1113  ;;  %v1494_v25 = vpop.permute.xlu0 %1138  ;;  %v281_v0 = vmul.f32 %v1131_v53, %v1496_v26  ;;  %v280_v9 = vmul.f32 %v1130_v54, %v1496_v26 }
  0x9b   :  { %v1116_v56 = vunpack.i.h.bf16 %v1492_v15  ;;  %v1115_v8 = vunpack.i.l.bf16 %v1492_v15  ;;  %v1141_v3 = vunpack.i.h.bf16 %v1494_v25  ;;  %v1140_v4 = vunpack.i.l.bf16 %v1494_v25 }
  0x9c   :  { %v202_v20 = vadd.f32 %v194_v59, %v118_v37  ;;  %v203_v21 = vadd.f32 %v195_v60, %v119_v38  ;;  %v288_v1 = vadd.f32 %v280_v9, %v204_v58  ;;  %v289_v2 = vadd.f32 %v281_v0, %v205_v57 }
  0x9d   :  { %v198_v15 = vmul.f32 %v1115_v8, %v191_v22  ;;  %v199_v17 = vmul.f32 %v1116_v56, %v191_v22  ;;  %v361_v25 = vmul.f32 %v1141_v3, %v1498_v27  ;;  %v360_v33 = vmul.f32 %v1140_v4, %v1498_v27 }
  0x9e   :  { %v1508_v34 = vpop.permute.xlu1 %1123  ;;  %v1149_v12 = vpop.permute.xlu0 %1148 }
  0x9f   :  { %v1126_v10 = vunpack.i.h.bf16 %v1508_v34  ;;  %v1125_v13 = vunpack.i.l.bf16 %v1508_v34  ;;  %v1151_v18 = vunpack.i.h.bf16 %v1149_v12  ;;  %v1150_v19 = vunpack.i.l.bf16 %v1149_v12 }
  0xa0   :  { %v206_v40 = vadd.f32 %v198_v15, %v122_v55  ;;  %v207_v12 = vadd.f32 %v199_v17, %v123_v11  ;;  %v368_v45 = vadd.f32 %v360_v33, %v284_v63  ;;  %v369_v46 = vadd.f32 %v361_v25, %v285_v62 }
  0xa1   :  { %v278_v34 = vmul.f32 %v1125_v13, %v1496_v26  ;;  %v279_v39 = vmul.f32 %v1126_v10, %v1496_v26  ;;  %v365_v37 = vmul.f32 %v1151_v18, %v1498_v27  ;;  %v364_v38 = vmul.f32 %v1150_v19, %v1498_v27 }
  0xa2   :  { %v1134_v5 = vpop.permute.xlu1 %1133  ;;  %v1159_v7 = vpop.permute.xlu0 %1158 }
  0xa3   :  { %v1136_v23 = vunpack.i.h.bf16 %v1134_v5  ;;  %v1135_v24 = vunpack.i.l.bf16 %v1134_v5  ;;  %v1161_v35 = vunpack.i.h.bf16 %v1159_v7  ;;  %v1160_v36 = vunpack.i.l.bf16 %v1159_v7 }
  0xa4   :  { %v286_v6 = vadd.f32 %v278_v34, %v202_v20  ;;  %v287_v48 = vadd.f32 %v279_v39, %v203_v21  ;;  %v372_v52 = vadd.f32 %v364_v38, %v288_v1  ;;  %v373_v53 = vadd.f32 %v365_v37, %v289_v2 }
  0xa5   :  { %v282_v16 = vmul.f32 %v1135_v24, %v1496_v26  ;;  %v283_v41 = vmul.f32 %v1136_v23, %v1496_v26  ;;  %v445_v47 = vmul.f32 %v1161_v35, %v1500_v28  ;;  %v444_v5 = vmul.f32 %v1160_v36, %v1500_v28 }
  0xa6   :  { %v1144_v61 = vpop.permute.xlu1 %1143  ;;  %v1169_v14 = vpop.permute.xlu0 %1168 }
  0xa7   :  { %v1146_v42 = vunpack.i.h.bf16 %v1144_v61  ;;  %v1145_v43 = vunpack.i.l.bf16 %v1144_v61  ;;  %v1171_v49 = vunpack.i.h.bf16 %v1169_v14  ;;  %v1170_v50 = vunpack.i.l.bf16 %v1169_v14 }
  0xa8   :  { %v290_v11 = vadd.f32 %v282_v16, %v206_v40  ;;  %v291_v26 = vadd.f32 %v283_v41, %v207_v12  ;;  %v452_v57 = vadd.f32 %v444_v5, %v368_v45  ;;  %v453_v58 = vadd.f32 %v445_v47, %v369_v46 }
  0xa9   :  { %v362_v55 = vmul.f32 %v1145_v43, %v1498_v27  ;;  %v363_v56 = vmul.f32 %v1146_v42, %v1498_v27  ;;  %v449_v61 = vmul.f32 %v1171_v49, %v1500_v28  ;;  %v448_v62 = vmul.f32 %v1170_v50, %v1500_v28 }
  0xaa   :  { %v1154_v32 = vpop.permute.xlu1 %1153  ;;  %v1179_v22 = vpop.permute.xlu0 %1178 }
  0xab   :  { %v1156_v54 = vunpack.i.h.bf16 %v1154_v32  ;;  %v1155_v7 = vunpack.i.l.bf16 %v1154_v32  ;;  %v1181_v59 = vunpack.i.h.bf16 %v1179_v22  ;;  %v1180_v60 = vunpack.i.l.bf16 %v1179_v22 }
  0xac   :  { %v370_v14 = vadd.f32 %v362_v55, %v286_v6  ;;  %v371_v15 = vadd.f32 %v363_v56, %v287_v48  ;;  %v456_v32 = vadd.f32 %v448_v62, %v372_v52  ;;  %v457_v25 = vadd.f32 %v449_v61, %v373_v53 }
  0xad   :  { %v366_v0 = vmul.f32 %v1155_v7, %v1498_v27  ;;  %v367_v9 = vmul.f32 %v1156_v54, %v1498_v27  ;;  %v529_v20 = vmul.f32 %v1181_v59, %v1502_v29  ;;  %v528_v21 = vmul.f32 %v1180_v60, %v1502_v29 }
  0xae   :  { %v1164_v44 = vpop.permute.xlu1 %1163  ;;  %v1189_v51 = vpop.permute.xlu0 %1188 }
  0xaf   :  { %v1166_v63 = vunpack.i.h.bf16 %v1164_v44  ;;  %v1165_v3 = vunpack.i.l.bf16 %v1164_v44  ;;  %v1191_v10 = vunpack.i.h.bf16 %v1189_v51  ;;  %v1190_v13 = vunpack.i.l.bf16 %v1189_v51 }
  0xb0   :  { %v374_v36 = vadd.f32 %v366_v0, %v290_v11  ;;  %v375_v1 = vadd.f32 %v367_v9, %v291_v26  ;;  %v536_v38 = vadd.f32 %v528_v21, %v452_v57  ;;  %v537_v16 = vadd.f32 %v529_v20, %v453_v58 }
  0xb1   :  { %v446_v33 = vmul.f32 %v1165_v3, %v1500_v28  ;;  %v447_v35 = vmul.f32 %v1166_v63, %v1500_v28  ;;  %v533_v2 = vmul.f32 %v1191_v10, %v1502_v29  ;;  %v532_v34 = vmul.f32 %v1190_v13, %v1502_v29  ;;  %v1561_v63 = vld [vmem:[%s1631_s1 + $0x8] sm:$0xff]  ;;  %v1566_v3 = vld [vmem:[%s1631_s1] sm:$0xff] }
  0xb2   :  { %v1174_v8 = vpop.permute.xlu1 %1173  ;;  %v1199_v4 = vpop.permute.xlu0 %1198  ;;  %vm761_vm0 = vcmp.ne.f32.partialorder %v1561_v63, 0.0  ;;  %vm760_vm1 = vcmp.ne.f32.partialorder %v1566_v3, 0.0 }
  0xb3   :  { %v1176_v17 = vunpack.i.h.bf16 %v1174_v8  ;;  %v1175_v18 = vunpack.i.l.bf16 %v1174_v8  ;;  %v1201_v23 = vunpack.i.h.bf16 %v1199_v4  ;;  %v1200_v24 = vunpack.i.l.bf16 %v1199_v4 }
  0xb4   :  { %v454_v43 = vadd.f32 %v446_v33, %v370_v14  ;;  %v455_v44 = vadd.f32 %v447_v35, %v371_v15  ;;  %v540_v5 = vadd.f32 %v532_v34, %v456_v32  ;;  %v541_v6 = vadd.f32 %v533_v2, %v457_v25  ;;  %v1577_v35 = vld [vmem:[%s1631_s1 + $0x28] sm:$0xff] }
  0xb5   :  { %v450_v39 = vmul.f32 %v1175_v18, %v1500_v28  ;;  %v451_v22 = vmul.f32 %v1176_v17, %v1500_v28  ;;  %v613_v41 = vmul.f32 %v1201_v23, %v1504_v30  ;;  %v612_v42 = vmul.f32 %v1200_v24, %v1504_v30 }
  0xb6   :  { %v1184_v19 = vpop.permute.xlu1 %1183  ;;  %v1209_v27 = vpop.permute.xlu0 %1208  ;;  %vm765_vm4 = vcmp.ne.f32.partialorder %v1577_v35, 0.0 }
  0xb7   :  { %v1211_v40 = vunpack.i.h.bf16 %v1209_v27  ;;  %v1210_v12 = vunpack.i.l.bf16 %v1209_v27  ;;  %v1186_v45 = vunpack.i.h.bf16 %v1184_v19  ;;  %v1185_v46 = vunpack.i.l.bf16 %v1184_v19  ;;  %v1582_v27 = vld [vmem:[%s1631_s1 + $0x20] sm:$0xff] }
  0xb8   :  { %v458_v50 = vadd.f32 %v450_v39, %v374_v36  ;;  %v459_v28 = vadd.f32 %v451_v22, %v375_v1  ;;  %v620_v54 = vadd.f32 %v612_v42, %v536_v38  ;;  %v621_v7 = vadd.f32 %v613_v41, %v537_v16 }
  0xb9   :  { %v617_v51 = vmul.f32 %v1211_v40, %v1504_v30  ;;  %v616_v52 = vmul.f32 %v1210_v12, %v1504_v30  ;;  %v530_v55 = vmul.f32 %v1185_v46, %v1502_v29  ;;  %v531_v56 = vmul.f32 %v1186_v45, %v1502_v29 }
  0xba   :  { %v1194_v37 = vpop.permute.xlu1 %1193  ;;  %v1219_v47 = vpop.permute.xlu0 %1218  ;;  %vm764_vm5 = vcmp.ne.f32.partialorder %v1582_v27, 0.0 }
  0xbb   :  { %v1221_v48 = vunpack.i.h.bf16 %v1219_v47  ;;  %v1220_v49 = vunpack.i.l.bf16 %v1219_v47  ;;  %v624_v4 = vadd.f32 %v616_v52, %v540_v5  ;;  %v625_v0 = vadd.f32 %v617_v51, %v541_v6  ;;  %v715_v47 = vld [vmem:[%s1631_s1 + $0x18] sm:$0xff] }
  0xbc   :  { %v1196_v9 = vunpack.i.h.bf16 %v1194_v37  ;;  %v1195_v10 = vunpack.i.l.bf16 %v1194_v37  ;;  %v538_v19 = vadd.f32 %v530_v55, %v454_v43  ;;  %v539_v24 = vadd.f32 %v531_v56, %v455_v44  ;;  %v718_v55 = vld [vmem:[%s1631_s1 + $0x30] sm:$0xff] }
  0xbd   :  { %v697_v11 = vmul.f32 %v1221_v48, %v1506_v31  ;;  %v696_v26 = vmul.f32 %v1220_v49, %v1506_v31  ;;  %vm763_vm2 = vcmp.ne.f32.partialorder %v715_v47, 0.0  ;;  %vm766_vm7 = vcmp.ne.f32.partialorder %v718_v55, 0.0 }
  0xbe   :  { %v1204_v53 = vpop.permute.xlu1 %1203  ;;  %v1229_v58 = vpop.permute.xlu0 %1228  ;;  %v534_v36 = vmul.f32 %v1195_v10, %v1502_v29  ;;  %v535_v1 = vmul.f32 %v1196_v9, %v1502_v29 }
  0xbf   :  { %v1206_v8 = vunpack.i.h.bf16 %v1204_v53  ;;  %v1205_v57 = vunpack.i.l.bf16 %v1204_v53  ;;  %v704_v59 = vadd.f32 %v696_v26, %v620_v54  ;;  %v705_v60 = vadd.f32 %v697_v11, %v621_v7  ;;  %v719_v26 = vld [vmem:[%s1631_s1 + $0x38] sm:$0xff] }
  0xc0   :  { %v1231_v61 = vunpack.i.h.bf16 %v1229_v58  ;;  %v1230_v62 = vunpack.i.l.bf16 %v1229_v58  ;;  %v542_v44 = vadd.f32 %v534_v36, %v458_v50  ;;  %v543_v45 = vadd.f32 %v535_v1, %v459_v28 }
  0xc1   :  { %v614_v14 = vmul.f32 %v1205_v57, %v1504_v30  ;;  %v721_v21 = vmul.f32 %v1561_v63, %v705_v60  ;;  %v720_v23 = vmul.f32 %v1566_v3, %v704_v59  ;;  %v615_v32 = vmul.f32 %v1206_v8, %v1504_v30 }
  0xc2   :  { %v1214_v13 = vpop.permute.xlu1 %1213  ;;  %v701_v15 = vmul.f32 %v1231_v61, %v1506_v31  ;;  %v700_v17 = vmul.f32 %v1230_v62, %v1506_v31  ;;  %vm767_vm6 = vcmp.ne.f32.partialorder %v719_v26, 0.0 }
  0xc3   :  { %v1215_v18 = vunpack.i.l.bf16 %v1214_v13  ;;  %v1216_v20 = vunpack.i.h.bf16 %v1214_v13  ;;  %v729_v34 = vmul.f32 0.5, %v721_v21  ;;  %v728_v39 = vmul.f32 0.5, %v720_v23 }
  0xc4   :  { %v708_v25 = vadd.f32 %v700_v17, %v624_v4  ;;  %v709_v33 = vadd.f32 %v701_v15, %v625_v0  ;;  %v622_v22 = vadd.f32 %v614_v14, %v538_v19  ;;  %v623_v42 = vadd.f32 %v615_v32, %v539_v24 }
  0xc5   :  { %v618_v40 = vmul.f32 %v1215_v18, %v1504_v30  ;;  %v619_v38 = vmul.f32 %v1216_v20, %v1504_v30  ;;  %1237 = vtanh.f32 %v729_v34  ;;  %v714_v30 = vld [vmem:[%s1631_s1 + $0x10] sm:$0xff]  ;;  %s1280_s1 = smov 120  }
  0xc6   :  { %v1224_v2 = vpop.permute.xlu1 %1223  ;;  %v725_v16 = vmul.f32 %v1577_v35, %v709_v33  ;;  %v724_v41 = vmul.f32 %v1582_v27, %v708_v25  ;;  %1239 = vtanh.f32 %v728_v39  ;;  %vm762_vm3 = vcmp.ne.f32.partialorder %v714_v30, 0.0 }
  0xc7   :  { %v1226_v12 = vunpack.i.h.bf16 %v1224_v2  ;;  %v1225_v37 = vunpack.i.l.bf16 %v1224_v2  ;;  %v626_v52 = vadd.f32 %v618_v40, %v542_v44  ;;  %v627_v53 = vadd.f32 %v619_v38, %v543_v45 }
  0xc8   :  { %v733_v5 = vmul.f32 0.5, %v725_v16  ;;  %v732_v54 = vmul.f32 0.5, %v724_v41 }
  0xc9   :  { %v698_v43 = vmul.f32 %v1225_v37, %v1506_v31  ;;  %v699_v29 = vmul.f32 %v1226_v12, %v1506_v31 }
  0xca   :  { %v1234_v46 = vpop.permute.xlu1 %1233  ;;  %1241 = vtanh.f32 %v733_v5 }
  0xcb   :  { %v706_v6 = vadd.f32 %v698_v43, %v622_v22  ;;  %v707_v48 = vadd.f32 %v699_v29, %v623_v42  ;;  %v1236_v49 = vunpack.i.h.bf16 %v1234_v46  ;;  %v1235_v51 = vunpack.i.l.bf16 %v1234_v46 }
  0xcc   :  { %1243 = vtanh.f32 %v732_v54 }
  0xcd   :  { %v702_v50 = vmul.f32 %v1235_v51, %v1506_v31  ;;  %v703_v28 = vmul.f32 %v1236_v49, %v1506_v31  ;;  %v723_v7 = vmul.f32 %v715_v47, %v707_v48  ;;  %v722_v11 = vmul.f32 %v714_v30, %v706_v6 }
  0xcf   :  { %v710_v56 = vadd.f32 %v702_v50, %v626_v52  ;;  %v711_v8 = vadd.f32 %v703_v28, %v627_v53  ;;  %v731_v57 = vmul.f32 0.5, %v723_v7  ;;  %v730_v58 = vmul.f32 0.5, %v722_v11  ;;  %v1238_v31 = vpop.eup %1237 }
  0xd0   :  { %v1240_v61 = vpop.eup %1239  ;;  %v745_v62 = vadd.f32 1.0, %v1238_v31 }
  0xd1   :  { %1245 = vtanh.f32 %v731_v57  ;;  %v727_v59 = vmul.f32 %v719_v26, %v711_v8  ;;  %v726_v60 = vmul.f32 %v718_v55, %v710_v56  ;;  %v744_v9 = vadd.f32 1.0, %v1240_v61 }
  0xd2   :  { %1247 = vtanh.f32 %v730_v58  ;;  %v753_v10 = vmul.f32 0.5, %v745_v62 }
  0xd3   :  { %v735_v4 = vmul.f32 0.5, %v727_v59  ;;  %v734_v0 = vmul.f32 0.5, %v726_v60  ;;  %v752_v13 = vmul.f32 0.5, %v744_v9 }
  0xd4   :  { %v769_v14 = vsel %vm761_vm0, %v753_v10, 1.0  ;;  %v1242_v15 = vpop.eup %1241 }
  0xd5   :  { %1249 = vtanh.f32 %v735_v4  ;;  %786 = vrot.lane.b32.xlu1 %v769_v14, %s1280_s1  ;;  %v768_v17 = vsel %vm760_vm1, %v752_v13, 1.0  ;;  %v749_v63 = vadd.f32 1.0, %v1242_v15 }
  0xd6   :  { %1251 = vtanh.f32 %v734_v0  ;;  %784 = vrot.lane.b32.xlu0 %v768_v17, %s1280_s1  ;;  %v1244_v18 = vpop.eup %1243 }
  0xd7   :  { %v748_v24 = vadd.f32 1.0, %v1244_v18  ;;  %v757_v1 = vmul.f32 0.5, %v749_v63 }
  0xd9   :  { %v756_v39 = vmul.f32 0.5, %v748_v24  ;;  %v773_v40 = vsel %vm765_vm4, %v757_v1, 1.0 }
  0xdb   :  { %v1246_v19 = vpop.eup %1245  ;;  %v772_v37 = vsel %vm764_vm5, %v756_v39, 1.0 }
  0xdc   :  { %v1248_v20 = vpop.eup %1247  ;;  %v747_v21 = vadd.f32 1.0, %v1246_v19 }
  0xdd   :  { %v746_v23 = vadd.f32 1.0, %v1248_v20 }
  0xde   :  { %v755_v3 = vmul.f32 0.5, %v747_v21 }
  0xdf   :  { %v1250_v32 = vpop.eup %1249  ;;  %v754_v25 = vmul.f32 0.5, %v746_v23 }
  0xe0   :  { %v1252_v33 = vpop.eup %1251  ;;  %v771_v36 = vsel %vm763_vm2, %v755_v3, 1.0  ;;  %v751_v2 = vadd.f32 1.0, %v1250_v32 }
  0xe1   :  { %790 = vrot.lane.b32.xlu1 %v771_v36, %s1280_s1  ;;  %v770_v34 = vsel %vm762_vm3, %v754_v25, 1.0  ;;  %v750_v22 = vadd.f32 1.0, %v1252_v33 }
  0xe2   :  { %788 = vrot.lane.b32.xlu0 %v770_v34, %s1280_s1  ;;  %v759_v12 = vmul.f32 0.5, %v751_v2 }
  0xe3   :  { %v758_v38 = vmul.f32 0.5, %v750_v22 }
  0xe4   :  { %v775_v16 = vsel %vm767_vm6, %v759_v12, 1.0 }
  0xe5   :  { %794 = vrot.lane.b32.xlu1 %v773_v40, %s1280_s1  ;;  %v774_v35 = vsel %vm766_vm7, %v758_v38, 1.0 }
  0xe6   :  { %792 = vrot.lane.b32.xlu0 %v772_v37, %s1280_s1 }
  0xe9   :  { %798 = vrot.lane.b32.xlu1 %v775_v16, %s1280_s1 }
  0xea   :  { %796 = vrot.lane.b32.xlu0 %v774_v35, %s1280_s1 }
 0x147   :  { %v787_v41 = vpop.permute.xlu1 %786 }
 0x148   :  { %v809_v42 = vmul.f32 %v787_v41, %v769_v14  ;;  %v785_v43 = vpop.permute.xlu0 %784 }
 0x149   :  { %v808_v27 = vmul.f32 %v785_v43, %v768_v17 }
 0x14a   :  { %826 = vrot.lane.b32.xlu1 %v809_v42, %s1281_s2 }
 0x14b   :  { %824 = vrot.lane.b32.xlu0 %v808_v27, %s1281_s2 }
 0x153   :  { %v791_v29 = vpop.permute.xlu1 %790 }
 0x154   :  { %v811_v44 = vmul.f32 %v791_v29, %v771_v36  ;;  %v789_v45 = vpop.permute.xlu0 %788 }
 0x155   :  { %v810_v46 = vmul.f32 %v789_v45, %v770_v34 }
 0x156   :  { %830 = vrot.lane.b32.xlu1 %v811_v44, %s1281_s2 }
 0x157   :  { %828 = vrot.lane.b32.xlu0 %v810_v46, %s1281_s2  ;;  %v795_v47 = vpop.permute.xlu1 %794 }
 0x158   :  { %v813_v30 = vmul.f32 %v795_v47, %v773_v40  ;;  %v793_v5 = vpop.permute.xlu0 %792 }
 0x159   :  { %v812_v6 = vmul.f32 %v793_v5, %v772_v37 }
 0x15a   :  { %834 = vrot.lane.b32.xlu1 %v813_v30, %s1281_s2 }
 0x15b   :  { %832 = vrot.lane.b32.xlu0 %v812_v6, %s1281_s2  ;;  %v799_v48 = vpop.permute.xlu1 %798 }
 0x15c   :  { %v815_v49 = vmul.f32 %v799_v48, %v775_v16  ;;  %v797_v51 = vpop.permute.xlu0 %796 }
 0x15d   :  { %v814_v52 = vmul.f32 %v797_v51, %v774_v35 }
 0x15e   :  { %838 = vrot.lane.b32.xlu1 %v815_v49, %s1281_s2 }
 0x15f   :  { %836 = vrot.lane.b32.xlu0 %v814_v52, %s1281_s2 }
 0x1bc   :  { %v827_v53 = vpop.permute.xlu1 %826 }
 0x1bd   :  { %v849_v54 = vmul.f32 %v827_v53, %v809_v42  ;;  %v825_v50 = vpop.permute.xlu0 %824 }
 0x1be   :  { %v848_v28 = vmul.f32 %v825_v50, %v808_v27 }
 0x1bf   :  { %866 = vrot.lane.b32.xlu1 %v849_v54, %s1282_s22 }
 0x1c0   :  { %864 = vrot.lane.b32.xlu0 %v848_v28, %s1282_s22 }
 0x1c8   :  { %v831_v7 = vpop.permute.xlu1 %830 }
 0x1c9   :  { %v851_v11 = vmul.f32 %v831_v7, %v811_v44  ;;  %v829_v26 = vpop.permute.xlu0 %828 }
 0x1ca   :  { %v850_v55 = vmul.f32 %v829_v26, %v810_v46 }
 0x1cb   :  { %870 = vrot.lane.b32.xlu1 %v851_v11, %s1282_s22 }
 0x1cc   :  { %868 = vrot.lane.b32.xlu0 %v850_v55, %s1282_s22  ;;  %v835_v56 = vpop.permute.xlu1 %834 }
 0x1cd   :  { %v853_v8 = vmul.f32 %v835_v56, %v813_v30  ;;  %v833_v57 = vpop.permute.xlu0 %832 }
 0x1ce   :  { %v852_v58 = vmul.f32 %v833_v57, %v812_v6 }
 0x1cf   :  { %874 = vrot.lane.b32.xlu1 %v853_v8, %s1282_s22 }
 0x1d0   :  { %872 = vrot.lane.b32.xlu0 %v852_v58, %s1282_s22  ;;  %v839_v59 = vpop.permute.xlu1 %838 }
 0x1d1   :  { %v855_v60 = vmul.f32 %v839_v59, %v815_v49  ;;  %v837_v31 = vpop.permute.xlu0 %836 }
 0x1d2   :  { %v854_v61 = vmul.f32 %v837_v31, %v814_v52 }
 0x1d3   :  { %878 = vrot.lane.b32.xlu1 %v855_v60, %s1282_s22 }
 0x1d4   :  { %876 = vrot.lane.b32.xlu0 %v854_v61, %s1282_s22 }
 0x231   :  { %v867_v62 = vpop.permute.xlu1 %866 }
 0x232   :  { %v889_v4 = vmul.f32 %v867_v62, %v849_v54  ;;  %v865_v0 = vpop.permute.xlu0 %864 }
 0x233   :  { %v888_v9 = vmul.f32 %v865_v0, %v848_v28 }
 0x234   :  { %906 = vrot.lane.b32.xlu1 %v889_v4, %s1283_s23 }
 0x235   :  { %904 = vrot.lane.b32.xlu0 %v888_v9, %s1283_s23 }
 0x23d   :  { %v871_v10 = vpop.permute.xlu1 %870 }
 0x23e   :  { %v891_v13 = vmul.f32 %v871_v10, %v851_v11  ;;  %v869_v14 = vpop.permute.xlu0 %868 }
 0x23f   :  { %v890_v15 = vmul.f32 %v869_v14, %v850_v55 }
 0x240   :  { %910 = vrot.lane.b32.xlu1 %v891_v13, %s1283_s23 }
 0x241   :  { %908 = vrot.lane.b32.xlu0 %v890_v15, %s1283_s23  ;;  %v875_v17 = vpop.permute.xlu1 %874 }
 0x242   :  { %v893_v18 = vmul.f32 %v875_v17, %v853_v8  ;;  %v873_v19 = vpop.permute.xlu0 %872 }
 0x243   :  { %v892_v20 = vmul.f32 %v873_v19, %v852_v58 }
 0x244   :  { %914 = vrot.lane.b32.xlu1 %v893_v18, %s1283_s23 }
 0x245   :  { %912 = vrot.lane.b32.xlu0 %v892_v20, %s1283_s23  ;;  %v879_v21 = vpop.permute.xlu1 %878 }
 0x246   :  { %v895_v63 = vmul.f32 %v879_v21, %v855_v60  ;;  %v877_v23 = vpop.permute.xlu0 %876 }
 0x247   :  { %v894_v24 = vmul.f32 %v877_v23, %v854_v61 }
 0x248   :  { %918 = vrot.lane.b32.xlu1 %v895_v63, %s1283_s23 }
 0x249   :  { %916 = vrot.lane.b32.xlu0 %v894_v24, %s1283_s23 }
 0x2a6   :  { %v907_v3 = vpop.permute.xlu1 %906 }
 0x2a7   :  { %v929_v32 = vmul.f32 %v907_v3, %v889_v4  ;;  %v905_v25 = vpop.permute.xlu0 %904 }
 0x2a8   :  { %v928_v33 = vmul.f32 %v905_v25, %v888_v9 }
 0x2a9   :  { %943 = vperm.xlu1 %1076, %v929_v32  }
 0x2aa   :  { %938 = vperm.xlu0 %1075, %v928_v33  }
 0x2b2   :  { %v911_v36 = vpop.permute.xlu1 %910 }
 0x2b3   :  { %v931_v1 = vmul.f32 %v911_v36, %v891_v13  ;;  %v909_v2 = vpop.permute.xlu0 %908 }
 0x2b4   :  { %v930_v34 = vmul.f32 %v909_v2, %v890_v15 }
 0x2b5   :  { %953 = vperm.xlu1 %1076, %v931_v1  }
 0x2b6   :  { %948 = vperm.xlu0 %1075, %v930_v34   ;;  %v915_v39 = vpop.permute.xlu1 %914 }
 0x2b7   :  { %v933_v22 = vmul.f32 %v915_v39, %v893_v18  ;;  %v913_v40 = vpop.permute.xlu0 %912 }
 0x2b8   :  { %v932_v12 = vmul.f32 %v913_v40, %v892_v20 }
 0x2b9   :  { %963 = vperm.xlu1 %1076, %v933_v22  }
 0x2ba   :  { %958 = vperm.xlu0 %1075, %v932_v12   ;;  %v919_v37 = vpop.permute.xlu1 %918 }
 0x2bb   :  { %v935_v38 = vmul.f32 %v919_v37, %v895_v63  ;;  %v917_v16 = vpop.permute.xlu0 %916 }
 0x2bc   :  { %v934_v35 = vmul.f32 %v917_v16, %v894_v24 }
 0x2bd   :  { %973 = vperm.xlu1 %1076, %v935_v38  }
 0x2be   :  { %968 = vperm.xlu0 %1075, %v934_v35  }
 0x328   :  { %v944_v41 = vpop.permute.xlu1 %943 }
 0x329   :  { %977 = vst [vmem:[#allocation2 + $0x8] sm:$0xff] %v944_v41  ;;  %v939_v42 = vpop.permute.xlu0 %938 }
 0x32a   :  { %976 = vst [vmem:[#allocation2] sm:$0xff] %v939_v42 }
 0x334   :  { %v954_v43 = vpop.permute.xlu1 %953 }
 0x335   :  { %979 = vst [vmem:[#allocation2 + $0x18] sm:$0xff] %v954_v43  ;;  %v949_v27 = vpop.permute.xlu0 %948 }
 0x336   :  { %978 = vst [vmem:[#allocation2 + $0x10] sm:$0xff] %v949_v27 }
 0x338   :  { %v964_v29 = vpop.permute.xlu1 %963 }
 0x339   :  { %981 = vst [vmem:[#allocation2 + $0x28] sm:$0xff] %v964_v29  ;;  %v959_v44 = vpop.permute.xlu0 %958 }
 0x33a   :  { %980 = vst [vmem:[#allocation2 + $0x20] sm:$0xff] %v959_v44 }
 0x33c   :  { %v974_v45 = vpop.permute.xlu1 %973 }
 0x33d   :  { %983 = vst [vmem:[#allocation2 + $0x38] sm:$0xff] %v974_v45  ;;  %v969_v46 = vpop.permute.xlu0 %968 }
 0x33e   :  { %982 = vst [vmem:[#allocation2 + $0x30] sm:$0xff] %v969_v46 }
 0x33f   :  { %1264 = shalt.err (!%p1261_p4)
}
 0x340   :  { %s1265_s29 = scalar_lea.hbm %s1634_s4, 1024 }
 0x341   :  { %p1266_p5 = scmp.ne.s32.totalorder %s1634_s4, %s1265_s29  ;;  %p1269_p6 = scmp.lt.u32.totalorder %s1265_s29, %s1634_s4 }
 0x343   :  { %p1271_p7 = pnand %p1269_p6, %p1266_p5 }
 0x345   :  { %1274 = shalt.err (!%p1271_p7)
}
 0x346   :  { %s1285_s3 = smov 128   ;;  %s1286_s7 = smov 8  }
 0x347   :  { %995 = dma.vmem_to_hbm [thread:$0]  %s990_s25, 1024, %s1634_s4, [#allocation3], %s1285_s3, %s1285_s3, %s1286_s7  }
 0x348   :  { %1275 = dma.done.wait [#allocation3], 1024  }
 0x349   :  { %1276 = vsyncadd [#allocation3], 4294966272 }
 0x34a   :  { %999 = vsyncpa [#allocation3], 1 }

</bundles_post_ra>
